<compile_context>
chip_gen: v6e
topology: v6e:2x2x1
jax: 0.10.0
libtpu: 0.0.40
codegen_flags: <defaults>
</compile_context>

<pallas_src>
import jax
import jax.numpy as jnp
from jax.experimental import pallas as pl
from jax.experimental.pallas import tpu as pltpu

EPS = 1e-10
LANE = 128


def _l2norm_kernel(x_ref, w_ref, o_ref):
    # x_ref / o_ref: (Nb, C, Rb, 128);  w_ref: (C, 1, 128)
    x = x_ref[...].astype(jnp.float32)

    # Channel-wise L2 norm per pixel. The reduction axis (1) is above the
    # sublane/lane dims -> plain full-vreg VPU adds, no cross-sublane work.
    norm = jnp.sqrt(jnp.sum(x * x, axis=1, keepdims=True)) + EPS  # (Nb,1,Rb,128)

    # Exact reciprocal (EUP) + VPU multiplies. approx=True would exceed the
    # 1e-5 tolerance, so keep it exact.
    inv = pl.reciprocal(norm, approx=False)

    w = w_ref[...].astype(jnp.float32)                            # (C,1,128)
    o_ref[...] = (x * inv * w[None, :, :, :]).astype(o_ref.dtype)


def _round_up(v, m):
    return -(-v // m) * m


def _vmem_block_bytes(shape, dtype):
    """VMEM bytes of one block, honoring sublane/lane tile padding."""
    it = jnp.dtype(dtype).itemsize
    sub = max(8, 32 // it)  # sublane tile: 8 (f32) / 16 (bf16) / 32 (int8)
    lead = 1
    for d in shape[:-2]:
        lead *= int(d)
    return lead * _round_up(int(shape[-2]), sub) * _round_up(int(shape[-1]), LANE) * it


def l2norm(x, weight, *, target_block_bytes=2 << 20, tiny_bytes=512 << 10):
    """x: (N, C, H, W); weight: (C,). Returns weight * x / ||x||_2(channel)."""
    N, C, H, W = x.shape
    HW = H * W
    itemsize = jnp.dtype(x.dtype).itemsize
    sub = max(8, 32 // itemsize)

    # Pad the spatial axis only up to the next multiple of 128 so it can be
    # viewed as (R, 128) sublane x lane tiles. For HW % 128 == 0 this is a
    # pure view (no extra HBM pass, no output slice).
    HW_pad = _round_up(HW, LANE)
    R = HW_pad // LANE
    x3 = x.reshape(N, C, HW)
    if HW_pad != HW:
        # TODO(synk): a channels-on-sublane variant with a masked final store
        # could avoid even this bounded (<128 lanes) pad pass.
        x3 = jnp.pad(x3, ((0, 0), (0, 0), (0, HW_pad - HW)))
    x4 = x3.reshape(N, C, R, LANE)

    # Tiny lane-dense weight block; constant index_map -> fetched once.
    w3 = jnp.broadcast_to(weight.astype(jnp.float32).reshape(C, 1, 1), (C, 1, LANE))

    # ---------------- block sizing ----------------
    total_bytes = N * C * R * LANE * itemsize
    row_bytes = C * LANE * itemsize  # bytes of one sublane row of a (1,C,*,128) block
    if total_bytes <= tiny_bytes:
        # Whole tensor in one block: multiple KiB-sized steps would be pure
        # grid-step overhead.
        Nb, Rb = N, R
    else:
        Nb = 1
        Rb = max(sub, (target_block_bytes // row_bytes) // sub * sub)
        if N == 1:
            # v7x megacore: keep >= 2 steps on a "parallel" axis so both
            # TensorCores get work.
            half = _round_up(-(-R // 2), sub)
            if sub <= half < R:
                Rb = min(Rb, half)
        Rb = min(Rb, R)
        if Rb == R and N > 1:
            # Spatial fits in one block: grow the batch block to amortize the
            # ~0.35us/step overhead, but keep >= 2 steps for the 2-TC split.
            blk = C * R * LANE * itemsize
            Nb = max(1, min((N + 1) // 2, target_block_bytes // max(1, blk)))

    grid = (pl.cdiv(N, Nb), pl.cdiv(R, Rb))

    # ---------------- VMEM accounting (sublane/lane padded, double-buffered) ----------------
    x_blk = _vmem_block_bytes((Nb, C, Rb, LANE), x.dtype)
    o_blk = _vmem_block_bytes((Nb, C, Rb, LANE), x.dtype)
    w_blk = _vmem_block_bytes((C, 1, LANE), jnp.float32)
    vmem_need = 2 * (x_blk + o_blk + w_blk)
    vmem_limit = min(64 << 20, max(8 << 20, int(1.5 * vmem_need) + (2 << 20)))

    out4 = pl.pallas_call(
        _l2norm_kernel,
        out_shape=jax.ShapeDtypeStruct((N, C, R, LANE), x.dtype),
        grid_spec=pltpu.PrefetchScalarGridSpec(
            num_scalar_prefetch=0,
            grid=grid,
            in_specs=[
                pl.BlockSpec((Nb, C, Rb, LANE), lambda n, r: (n, 0, r, 0)),
                pl.BlockSpec((C, 1, LANE), lambda n, r: (0, 0, 0)),
            ],
            out_specs=pl.BlockSpec((Nb, C, Rb, LANE), lambda n, r: (n, 0, r, 0)),
        ),
        compiler_params=pltpu.CompilerParams(
            dimension_semantics=("parallel", "parallel"),
            vmem_limit_bytes=vmem_limit,
        ),
    )(x4, w3)

    out3 = out4.reshape(N, C, HW_pad)
    if HW_pad != HW:
        out3 = out3[:, :, :HW]
    return out3.reshape(N, C, H, W)


if __name__ == "__main__":
    key = jax.random.PRNGKey(0)

    # Module config: n_channels=4, scale (gamma)=20.0 -> weight = full(4, 20.0)
    n_channels, gamma = 4, 20.0
    weight = jnp.full((n_channels,), gamma, dtype=jnp.float32)
    x = jax.random.normal(key, (2, n_channels, 16, 16), dtype=jnp.float32)

    out = jax.block_until_ready(l2norm(x, weight))

    norm = jnp.sqrt(jnp.sum(x ** 2, axis=1, keepdims=True)) + EPS
    ref = weight[None, :, None, None] * (x / norm)
    assert out.shape == x.shape
    assert jnp.allclose(out, ref, atol=1e-5, rtol=1e-5)

    # Second small config: HW not a multiple of 128 and larger C
    # (exercises the bounded pad path and a deeper channel reduction).
    w2 = jnp.full((32,), 10.0, dtype=jnp.float32)
    x2 = jax.random.normal(jax.random.PRNGKey(0), (1, 32, 20, 20), dtype=jnp.float32)
    out2 = jax.block_until_ready(l2norm(x2, w2))
    norm2 = jnp.sqrt(jnp.sum(x2 ** 2, axis=1, keepdims=True)) + EPS
    ref2 = w2[None, :, None, None] * (x2 / norm2)
    assert out2.shape == x2.shape
    assert jnp.allclose(out2, ref2, atol=1e-5, rtol=1e-5)

    print("KERNEL_OK")
</pallas_src>

<mosaic_0001>
module attributes {stable_mosaic.version = 11 : i64} {
  func.func @_l2norm_kernel(%arg0: i32, %arg1: i32, %arg2: memref<2x4x2x128xf32, #tpu.memory_space<vmem>>, %arg3: memref<4x1x128xf32, #tpu.memory_space<vmem>>, %arg4: memref<2x4x2x128xf32, #tpu.memory_space<vmem>>) attributes {dimension_semantics = [#tpu.dimension_semantics<parallel>, #tpu.dimension_semantics<parallel>], iteration_bounds = array<i64: 1, 1>, scalar_prefetch = 0 : i64, scratch_operands = 0 : i64, tpu.core_type = #tpu.core_type<tc>, window_params = [{transform_indices = @transform_0, window_bounds = array<i64: 2, 4, 2, 128>}, {pipeline_mode = #tpu.pipeline_mode<synchronous>, transform_indices = @transform_1, window_bounds = array<i64: 4, 1, 128>}, {transform_indices = @transform_2, window_bounds = array<i64: 2, 4, 2, 128>}]} {
    %c0 = arith.constant 0 : index
    %c0_0 = arith.constant 0 : index
    %c0_1 = arith.constant 0 : index
    %c0_2 = arith.constant 0 : index
    %0 = vector.load %arg2[%c0, %c0_0, %c0_1, %c0_2] : memref<2x4x2x128xf32, #tpu.memory_space<vmem>>, vector<2x4x2x128xf32>
    %1 = arith.mulf %0, %0 : vector<2x4x2x128xf32>
    %cst = arith.constant dense<0.000000e+00> : vector<2x2x128xf32>
    %2 = vector.multi_reduction <add>, %1, %cst [1] : vector<2x4x2x128xf32> to vector<2x2x128xf32>
    %3 = vector.shape_cast %2 : vector<2x2x128xf32> to vector<2x1x2x128xf32>
    %4 = math.sqrt %3 : vector<2x1x2x128xf32>
    %cst_3 = arith.constant 1.000000e-10 : f32
    %5 = vector.broadcast %cst_3 : f32 to vector<2x1x2x128xf32>
    %6 = arith.addf %4, %5 : vector<2x1x2x128xf32>
    %7 = tpu.reciprocal %6 : vector<2x1x2x128xf32> -> vector<2x1x2x128xf32>
    %c0_4 = arith.constant 0 : index
    %c0_5 = arith.constant 0 : index
    %c0_6 = arith.constant 0 : index
    %8 = vector.load %arg3[%c0_4, %c0_5, %c0_6] : memref<4x1x128xf32, #tpu.memory_space<vmem>>, vector<4x1x128xf32>
    %9 = vector.broadcast %7 : vector<2x1x2x128xf32> to vector<2x4x2x128xf32>
    %10 = arith.mulf %0, %9 : vector<2x4x2x128xf32>
    %11 = vector.shape_cast %8 : vector<4x1x128xf32> to vector<1x4x1x128xf32>
    %12 = vector.broadcast %11 : vector<1x4x1x128xf32> to vector<2x4x2x128xf32>
    %13 = arith.mulf %10, %12 : vector<2x4x2x128xf32>
    %c0_7 = arith.constant 0 : index
    %c0_8 = arith.constant 0 : index
    %c0_9 = arith.constant 0 : index
    %c0_10 = arith.constant 0 : index
    %14 = vector.load %arg4[%c0_7, %c0_8, %c0_9, %c0_10] : memref<2x4x2x128xf32, #tpu.memory_space<vmem>>, vector<2x4x2x128xf32>
    tpu.vector_store %arg4[%c0_7, %c0_8, %c0_9, %c0_10], %13 {strides = array<i32>} : memref<2x4x2x128xf32, #tpu.memory_space<vmem>>, vector<2x4x2x128xf32>,
    return
  }
  func.func @transform_0(%arg0: i32, %arg1: i32) -> (i32, i32, i32, i32) {
    %c0_i32 = arith.constant 0 : i32
    %c0_i32_0 = arith.constant 0 : i32
    %c0_i32_1 = arith.constant 0 : i32
    return %arg0, %c0_i32, %arg1, %c0_i32_0 : i32, i32, i32, i32
  }
  func.func @transform_1(%arg0: i32, %arg1: i32) -> (i32, i32, i32) {
    %c0_i32 = arith.constant 0 : i32
    %c0_i32_0 = arith.constant 0 : i32
    %c0_i32_1 = arith.constant 0 : i32
    %c0_i32_2 = arith.constant 0 : i32
    return %c0_i32, %c0_i32_0, %c0_i32_1 : i32, i32, i32
  }
  func.func @transform_2(%arg0: i32, %arg1: i32) -> (i32, i32, i32, i32) {
    %c0_i32 = arith.constant 0 : i32
    %c0_i32_0 = arith.constant 0 : i32
    %c0_i32_1 = arith.constant 0 : i32
    return %arg0, %c0_i32, %arg1, %c0_i32_0 : i32, i32, i32, i32
  }
}

</mosaic_0001>

<bundles_post_ra>
// kernel: tpu_custom_call.1
= control target key start
LH: loop header
LB: loop body
LE: loop exit
PB: predicated region body
PF: predicated region fallthrough
CT: control target
= control target key end

     0   :  { %7 = vsyncpa [#allocation3], 0  ;;  %s289_s0 = inlined_call_operand.hbm [shape: f32[2,4,2,128], index: 0, kind: input, shape index: {}]   ;;  %s290_s1 = inlined_call_operand.hbm [shape: f32[4,1,128], index: 1, kind: input, shape index: {}]   ;;  %s291_s2 = inlined_call_operand.hbm [shape: f32[2,4,2,128], index: 2, kind: output, shape index: {}]  }
   0x1   :  { %8 = vsyncpa [#allocation6], 0 }
   0x2   :  { %9 = vsyncpa [#allocation4], 0  ;;  %s244_s9 = smov [#allocation2]  }
   0x3   :  { %s15_s10 = sshll.u32 %s244_s9, 4  ;;  %s16_s10 = int_to_ptr.vmem [resolvable:$true] %s15_s10 }
   0x4   :  { %s186_s11 = scalar_lea.vmem %s16_s10, 256  ;;  %p191_p1 = scmp.lt.s32.totalorder %s16_s10, %s16_s10 }
   0x5   :  { %p187_p0 = scmp.ne.s32.totalorder %s16_s10, %s186_s11  ;;  %p192_p2 = scmp.lt.s32.totalorder %s186_s11, %s186_s11 }
   0x7   :  { %p193_p3 = por %p192_p2, %p191_p1 }
   0x9   :  { %p194_p4 = pnand %p193_p3, %p187_p0 }
   0xb   :  { %197 = shalt.err (!%p194_p4)
}
   0xc   :  { %s245_s12 = smov 32   ;;  %s246_s13 = smov 2  }
   0xd   :  { %21 = dma.hbm_to_vmem [thread:$0]  %s289_s0, 256, %s16_s10, [#allocation3], %s245_s12, %s245_s12, %s246_s13  }
   0xe   :  { %s247_s16 = smov [#allocation5]  }
   0xf   :  { %s27_s17 = sshll.u32 %s247_s16, 4  ;;  %s28_s17 = int_to_ptr.vmem [resolvable:$true] %s27_s17 }
  0x10   :  { %s206_s18 = scalar_lea.vmem %s28_s17, 64  ;;  %p211_p6 = scmp.lt.s32.totalorder %s28_s17, %s28_s17 }
  0x11   :  { %p207_p5 = scmp.ne.s32.totalorder %s28_s17, %s206_s18  ;;  %p212_p7 = scmp.lt.s32.totalorder %s206_s18, %s206_s18 }
  0x13   :  { %p213_p8 = por %p212_p7, %p211_p6 }
  0x15   :  { %p214_p9 = pnand %p213_p8, %p207_p5 }
  0x17   :  { %217 = shalt.err (!%p214_p9)
}
  0x18   :  { %s248_s19 = smov 16   ;;  %s249_s20 = smov 1  }
  0x19   :  { %33 = dma.hbm_to_vmem [thread:$0]  %s290_s1, 64, %s28_s17, [#allocation6], %s248_s19, %s248_s19, %s249_s20  }
  0x1a   :  { %238 = dma.done.wait [#allocation3], 256  }
  0x1b   :  { %239 = vsyncadd [#allocation3], 4294967040 }
  0x1c   :  { %240 = dma.done.wait [#allocation6], 64  }
  0x1d   :  { %241 = vsyncadd [#allocation6], 4294967232  ;;  %vm56_vm0 = vcmask 1041408   ;;  %v40_v0 = vld [vmem:[#allocation2] sm:$0x3]  ;;  %s250_s0 = smov [#allocation7]  }
  0x1e   :  { %v41_v1 = vld [vmem:[#allocation2 + $0x2] sm:$0x3]  ;;  %v42_v2 = vld [vmem:[#allocation2 + $0x4] sm:$0x3]  ;;  %v43_v3 = vld [vmem:[#allocation2 + $0x6] sm:$0x3]  ;;  %v48_v4 = vmul.f32 %v40_v0, %v40_v0 }
  0x1f   :  { %v49_v5 = vmul.f32 %v41_v1, %v41_v1  ;;  %v50_v6 = vmul.f32 %v42_v2, %v42_v2  ;;  %v51_v7 = vmul.f32 %v43_v3, %v43_v3  ;;  %v44_v8 = vld [vmem:[#allocation2 + $0x8] sm:$0x3]  ;;  %v45_v12 = vld [vmem:[#allocation2 + $0xa] sm:$0x3]  ;;  %v46_v15 = vld [vmem:[#allocation2 + $0xc] sm:$0x3] }
  0x20   :  { %v57_v9 = vsel %vm56_vm0, %v48_v4, 0.0  ;;  %v52_v13 = vmul.f32 %v44_v8, %v44_v8  ;;  %v47_v16 = vld [vmem:[#allocation2 + $0xe] sm:$0x3]  ;;  %v53_v17 = vmul.f32 %v45_v12, %v45_v12  ;;  %v54_v19 = vmul.f32 %v46_v15, %v46_v15  ;;  %v159_v42 = vld [vmem:[#allocation5] ss:$0 sm:$0xff]  ;;  %s146_s1 = sshll.u32 %s250_s0, 4  ;;  %s147_s1 = int_to_ptr.vmem [resolvable:$true] %s146_s1 }
  0x21   :  { %v58_v10 = vsel %vm56_vm0, %v49_v5, 0.0  ;;  %v60_v11 = vsel %vm56_vm0, %v50_v6, 0.0  ;;  %v62_v18 = vsel %vm56_vm0, %v51_v7, 0.0  ;;  %v55_v20 = vmul.f32 %v47_v16, %v47_v16  ;;  %v160_v44 = vld [vmem:[#allocation5 + $0x1] ss:$0 sm:$0xff]  ;;  %s218_s23 = scalar_lea.vmem %s147_s1, 256  ;;  %p223_p11 = scmp.lt.s32.totalorder %s147_s1, %s147_s1 }
  0x22   :  { %v59_v14 = vadd.f32 %v58_v10, %v57_v9  ;;  %v64_v21 = vsel %vm56_vm0, %v52_v13, 0.0  ;;  %v65_v23 = vsel %vm56_vm0, %v53_v17, 0.0  ;;  %v67_v25 = vsel %vm56_vm0, %v54_v19, 0.0  ;;  %v161_v45 = vld [vmem:[#allocation5 + $0x2] ss:$0 sm:$0xff]  ;;  %p219_p10 = scmp.ne.s32.totalorder %s147_s1, %s218_s23  ;;  %p224_p12 = scmp.lt.s32.totalorder %s218_s23, %s218_s23 }
  0x23   :  { %v66_v24 = vadd.f32 %v65_v23, %v64_v21  ;;  %v69_v27 = vsel %vm56_vm0, %v55_v20, 0.0  ;;  %v162_v46 = vld [vmem:[#allocation5 + $0x3] ss:$0 sm:$0xff] }
  0x24   :  { %v61_v22 = vadd.f32 %v60_v11, %v59_v14  ;;  %p225_p13 = por %p224_p12, %p223_p11 }
  0x25   :  { %v68_v28 = vadd.f32 %v67_v25, %v66_v24 }
  0x26   :  { %v63_v26 = vadd.f32 %v62_v18, %v61_v22  ;;  %p226_p0 = pnand %p225_p13, %p219_p10 }
  0x27   :  { %v70_v29 = vadd.f32 %v69_v27, %v68_v28 }
  0x28   :  { %170 = vrsqrt.f32 %v63_v26  ;;  %vm73_vm1 = vcmp.eq.f32.partialorder %v63_v26, inf  ;;  %v76_v31 = vand.u32 2147483648, %v63_v26  ;;  %vm75_vm2 = vcmp.eq.f32.partialorder %v63_v26, 0.0 }
  0x29   :  { %172 = vrsqrt.f32 %v70_v29  ;;  %vm80_vm3 = vcmp.eq.f32.partialorder %v70_v29, inf  ;;  %v83_v35 = vand.u32 2147483648, %v70_v29  ;;  %vm82_vm4 = vcmp.eq.f32.partialorder %v70_v29, 0.0 }
  0x35   :  { %v171_v30 = vpop.eup %170 }
  0x36   :  { %v72_v32 = vmul.f32 %v171_v30, %v63_v26  ;;  %v173_v33 = vpop.eup %172 }
  0x37   :  { %v79_v37 = vmul.f32 %v173_v33, %v70_v29 }
  0x38   :  { %v74_v34 = vsel %vm73_vm1, %v63_v26, %v72_v32 }
  0x39   :  { %v77_v36 = vsel %vm75_vm2, %v76_v31, %v74_v34  ;;  %v81_v39 = vsel %vm80_vm3, %v70_v29, %v79_v37 }
  0x3a   :  { %v85_v38 = vadd.f32 1e-10, %v77_v36  ;;  %v84_v40 = vsel %vm82_vm4, %v83_v35, %v81_v39 }
  0x3b   :  { %v86_v41 = vadd.f32 1e-10, %v84_v40 }
  0x3c   :  { %174 = vrcp.f32 %v85_v38 }
  0x3d   :  { %176 = vrcp.f32 %v86_v41 }
  0x49   :  { %v175_v43 = vpop.eup %174 }
  0x4a   :  { %v93_v47 = vmul.f32 %v175_v43, %v40_v0  ;;  %v94_v48 = vmul.f32 %v175_v43, %v41_v1  ;;  %v95_v49 = vmul.f32 %v175_v43, %v42_v2  ;;  %v96_v50 = vmul.f32 %v175_v43, %v43_v3  ;;  %v177_v51 = vpop.eup %176 }
  0x4b   :  { %v97_v56 = vmul.f32 %v177_v51, %v44_v8  ;;  %v98_v57 = vmul.f32 %v177_v51, %v45_v12  ;;  %v99_v58 = vmul.f32 %v177_v51, %v46_v15  ;;  %v100_v59 = vmul.f32 %v177_v51, %v47_v16 }
  0x4c   :  { %v125_v52 = vmul.f32 %v159_v42, %v93_v47  ;;  %v126_v53 = vmul.f32 %v160_v44, %v94_v48  ;;  %v127_v54 = vmul.f32 %v161_v45, %v95_v49  ;;  %v128_v55 = vmul.f32 %v162_v46, %v96_v50 }
  0x4d   :  { %v129_v60 = vmul.f32 %v159_v42, %v97_v56  ;;  %v130_v61 = vmul.f32 %v160_v44, %v98_v57  ;;  %v131_v62 = vmul.f32 %v161_v45, %v99_v58  ;;  %v132_v63 = vmul.f32 %v162_v46, %v100_v59 }
  0x4e   :  { %133 = vst [vmem:[#allocation7] sm:$0x3] %v125_v52  ;;  %134 = vst [vmem:[#allocation7 + $0x2] sm:$0x3] %v126_v53 }
  0x4f   :  { %135 = vst [vmem:[#allocation7 + $0x4] sm:$0x3] %v127_v54  ;;  %136 = vst [vmem:[#allocation7 + $0x6] sm:$0x3] %v128_v55 }
  0x50   :  { %137 = vst [vmem:[#allocation7 + $0x8] sm:$0x3] %v129_v60  ;;  %138 = vst [vmem:[#allocation7 + $0xa] sm:$0x3] %v130_v61 }
  0x51   :  { %139 = vst [vmem:[#allocation7 + $0xc] sm:$0x3] %v131_v62  ;;  %140 = vst [vmem:[#allocation7 + $0xe] sm:$0x3] %v132_v63 }
  0x52   :  { %229 = shalt.err (!%p226_p0)
}
  0x53   :  { %152 = dma.vmem_to_hbm [thread:$0]  %s147_s1, 256, %s291_s2, [#allocation4], %s245_s12, %s245_s12, %s246_s13  }
  0x54   :  { %242 = dma.done.wait [#allocation4], 256  }
  0x55   :  { %243 = vsyncadd [#allocation4], 4294967040 }
  0x56   :  { %156 = vsyncpa [#allocation3], 1 }
  0x57   :  { %157 = vsyncpa [#allocation6], 1 }
  0x58   :  { %158 = vsyncpa [#allocation4], 1 }

</bundles_post_ra>
